<compile_context>
chip_gen: v7x
topology: tpu7x:2x2x1
jax: 0.10.0
libtpu: 0.0.40
codegen_flags: <defaults>
</compile_context>

<pallas_src>
import functools

import jax
import jax.numpy as jnp
from jax import lax
from jax.experimental import pallas as pl
from jax.experimental.pallas import tpu as pltpu


def _features_decoder_kernel(
    feat_ref,    # (Bp, F)     f32  raw features (padded batch rows are zero)
    emb_ref,     # (T*Bp, E)   f32  embedded tokens, time-major rows
    len_ref,     # (Bp, 1)     i32  valid lengths (0 for padded batch rows)
    wcell_ref,   # (F, 4H)     f32  LSTMCell W_ih^T
    bcell_ref,   # (1, 4H)     f32  LSTMCell b_ih + b_hh
    w_in_ref,    # (E, 8H)     f32  [W_ih_fwd^T | W_ih_bwd^T]
    b_in_ref,    # (1, 8H)     f32  [b_fwd | b_bwd] (b_ih + b_hh per direction)
    whf_ref,     # (H, 4H)     f32  fwd W_hh^T
    whb_ref,     # (H, 4H)     f32  bwd W_hh^T
    wfc_ref,     # (2H, TV)    f32  fc weight^T, current vocab tile
    bfc_ref,     # (1, TV)     f32  fc bias, current vocab tile
    out_ref,     # (T*Bp, TV)  f32  logits, current vocab tile (lane-dense store)
    xp_ref,      # (T*Bp, 8H)  f32  scratch: hoisted input projections (both dirs)
    hid_ref,     # (T*Bp, 2H)  f32  scratch: masked [fwd | bwd] hidden states
    *,
    seq_len,
    batch_pad,
    hidden_dim,
):
    T, Bp, H = seq_len, batch_pad, hidden_dim
    H4 = 4 * H

    def split_gates(g):
        # PyTorch LSTM gate order: i, f, g, o
        i = jax.nn.sigmoid(g[:, 0 * H:1 * H])
        f = jax.nn.sigmoid(g[:, 1 * H:2 * H])
        gg = jnp.tanh(g[:, 2 * H:3 * H])
        o = jax.nn.sigmoid(g[:, 3 * H:4 * H])
        return i, f, gg, o

    # The recurrence (and everything feeding it) runs once; vocab tiles v > 0
    # only redo the cheap FC stage on the scratch result.
    @pl.when(pl.program_id(0) == 0)
    def _recurrence():
        # ---- normalize(features): L2 along feature dim (F.normalize, p=2) ----
        feats = feat_ref[...]
        norm = jnp.sqrt(jnp.sum(feats * feats, axis=1, keepdims=True))
        feats = feats / jnp.maximum(norm, 1e-12)

        # ---- LSTMCell(features) with zero initial (h, c): h @ W_hh == 0 ----
        gates0 = (jnp.dot(feats, wcell_ref[...],
                          preferred_element_type=jnp.float32) + bcell_ref[...])
        i0, f0, g0, o0 = split_gates(gates0)
        c_init = i0 * g0                        # f0 * 0 + i0 * g0
        h_init = o0 * jnp.tanh(c_init)

        # ---- hoisted input projection: one MXU matmul, biases folded in ----
        xp_ref[...] = (jnp.dot(emb_ref[...], w_in_ref[...],
                               preferred_element_type=jnp.float32) + b_in_ref[...])

        lengths = len_ref[...]                  # (Bp, 1) int32

        # ---- forward direction (state may evolve past length; output masked) ----
        def fwd_body(t, carry):
            h, c = carry
            r = pl.multiple_of(t * Bp, Bp)
            g = (xp_ref[pl.ds(r, Bp), 0:H4]
                 + jnp.dot(h, whf_ref[...], preferred_element_type=jnp.float32))
            i, f, gg, o = split_gates(g)
            c = f * c + i * gg
            h = o * jnp.tanh(c)
            m = (lengths > t).astype(jnp.float32)
            hid_ref[pl.ds(r, Bp), 0:H] = h * m
            return h, c

        lax.fori_loop(0, T, fwd_body, (h_init, c_init))

        # ---- reverse direction (packed: sequence i reversed over first L_i steps) ----
        def bwd_body(s, carry):
            hb, cb = carry
            t = T - 1 - s
            r = pl.multiple_of(t * Bp, Bp)
            g = (xp_ref[pl.ds(r, Bp), H4:2 * H4]
                 + jnp.dot(hb, whb_ref[...], preferred_element_type=jnp.float32))
            i, f, gg, o = split_gates(g)
            c_new = f * cb + i * gg
            h_new = o * jnp.tanh(c_new)
            m = (lengths > t).astype(jnp.float32)
            hid_ref[pl.ds(r, Bp), H:2 * H] = h_new * m
            hb = m * h_new + (1.0 - m) * hb     # stay at initial state while t >= L_i
            cb = m * c_new + (1.0 - m) * cb
            return hb, cb

        lax.fori_loop(0, T, bwd_body, (h_init, c_init))

    # ---- fused FC for this vocab tile: single matmul + lane-dense store ----
    out_ref[...] = (jnp.dot(hid_ref[...], wfc_ref[...],
                            preferred_element_type=jnp.float32) + bfc_ref[...])


def _pick_vocab_tile(V):
    for tv in (2048, 1024, 512, 256, 128):
        if V % tv == 0:
            return tv
    return V


def features_decoder_forward(params, features, token_ids, lengths):
    """Wrapper: embedding gather + batch padding + parameter plumbing in JAX,
    hot path (normalize, LSTMCell, bi-LSTM recurrence, FC) in Pallas."""
    B, T = token_ids.shape
    F_dim = features.shape[1]
    E = params["embedding"].shape[1]
    H = params["lstm_w_hh_f"].shape[1]
    V = params["fc_b"].shape[0]

    Bp = max(8, ((B + 7) // 8) * 8)             # pad batch to a sublane multiple

    # Embedding lookup is a gather — done as plain-JAX glue (no clean Pallas op).
    embedded = jnp.take(params["embedding"], token_ids, axis=0).astype(jnp.float32)

    feats = jnp.zeros((Bp, F_dim), jnp.float32).at[:B].set(features.astype(jnp.float32))
    emb_p = jnp.zeros((Bp, T, E), jnp.float32).at[:B].set(embedded)
    emb2d = emb_p.transpose(1, 0, 2).reshape(T * Bp, E)        # time-major rows
    len2d = jnp.zeros((Bp, 1), jnp.int32).at[:B, 0].set(lengths.astype(jnp.int32))

    w_in = jnp.concatenate(
        [params["lstm_w_ih_f"].T, params["lstm_w_ih_r"].T], axis=1).astype(jnp.float32)
    b_in = jnp.concatenate(
        [params["lstm_b_ih_f"] + params["lstm_b_hh_f"],
         params["lstm_b_ih_r"] + params["lstm_b_hh_r"]]).reshape(1, -1).astype(jnp.float32)

    args = (
        feats,
        emb2d,
        len2d,
        params["cell_w_ih"].T.astype(jnp.float32),
        (params["cell_b_ih"] + params["cell_b_hh"]).reshape(1, -1).astype(jnp.float32),
        w_in,
        b_in,
        params["lstm_w_hh_f"].T.astype(jnp.float32),
        params["lstm_w_hh_r"].T.astype(jnp.float32),
        params["fc_w"].T.astype(jnp.float32),
        params["fc_b"].reshape(1, -1).astype(jnp.float32),
    )

    tv = _pick_vocab_tile(V)
    nvt = V // tv

    kernel = functools.partial(
        _features_decoder_kernel, seq_len=T, batch_pad=Bp, hidden_dim=H)

    out2d = pl.pallas_call(
        kernel,
        out_shape=jax.ShapeDtypeStruct((T * Bp, V), jnp.float32),
        grid_spec=pltpu.PrefetchScalarGridSpec(
            num_scalar_prefetch=0,
            grid=(nvt,),
            in_specs=[
                pl.BlockSpec((Bp, F_dim), lambda v: (0, 0)),
                pl.BlockSpec((T * Bp, E), lambda v: (0, 0)),
                pl.BlockSpec((Bp, 1), lambda v: (0, 0)),
                pl.BlockSpec((F_dim, 4 * H), lambda v: (0, 0)),
                pl.BlockSpec((1, 4 * H), lambda v: (0, 0)),
                pl.BlockSpec((E, 8 * H), lambda v: (0, 0)),
                pl.BlockSpec((1, 8 * H), lambda v: (0, 0)),
                pl.BlockSpec((H, 4 * H), lambda v: (0, 0)),
                pl.BlockSpec((H, 4 * H), lambda v: (0, 0)),
                pl.BlockSpec((2 * H, tv), lambda v: (0, v)),
                pl.BlockSpec((1, tv), lambda v: (0, v)),
            ],
            out_specs=pl.BlockSpec((T * Bp, tv), lambda v: (0, v)),
            scratch_shapes=[
                pltpu.VMEM((T * Bp, 8 * H), jnp.float32),   # hoisted input projections
                pltpu.VMEM((T * Bp, 2 * H), jnp.float32),   # masked [fwd | bwd] hiddens
            ],
        ),
        # "arbitrary": vocab tiles reuse the recurrence scratch computed at v == 0.
        compiler_params=pltpu.CompilerParams(dimension_semantics=("arbitrary",)),
    )(*args)

    # (T*Bp, V) -> (B, T, V), dropping the padded batch rows.
    return out2d.reshape(T, Bp, V).transpose(1, 0, 2)[:B]


def init_params(key, vocab_size, hidden_dim, embedding_dim, features_dim):
    """Deterministic synthetic parameters (PyTorch-style uniform +-1/sqrt(H))."""
    ks = jax.random.split(key, 15)
    s = hidden_dim ** -0.5

    def u(k, shape):
        return jax.random.uniform(k, shape, jnp.float32, -s, s)

    return {
        "embedding":   jax.random.normal(ks[0], (vocab_size, embedding_dim), jnp.float32),
        # LSTMCell (features_dim -> hidden_dim); W_hh unused since h0 = 0
        "cell_w_ih":   u(ks[1], (4 * hidden_dim, features_dim)),
        "cell_b_ih":   u(ks[2], (4 * hidden_dim,)),
        "cell_b_hh":   u(ks[3], (4 * hidden_dim,)),
        # bidirectional LSTM, 1 layer (embedding_dim -> hidden_dim)
        "lstm_w_ih_f": u(ks[4], (4 * hidden_dim, embedding_dim)),
        "lstm_w_hh_f": u(ks[5], (4 * hidden_dim, hidden_dim)),
        "lstm_b_ih_f": u(ks[6], (4 * hidden_dim,)),
        "lstm_b_hh_f": u(ks[7], (4 * hidden_dim,)),
        "lstm_w_ih_r": u(ks[8], (4 * hidden_dim, embedding_dim)),
        "lstm_w_hh_r": u(ks[9], (4 * hidden_dim, hidden_dim)),
        "lstm_b_ih_r": u(ks[10], (4 * hidden_dim,)),
        "lstm_b_hh_r": u(ks[11], (4 * hidden_dim,)),
        # fc: hidden_dim * 2 -> vocab_size
        "fc_w":        u(ks[12], (vocab_size, 2 * hidden_dim)),
        "fc_b":        u(ks[13], (vocab_size,)),
    }


if __name__ == "__main__":
    B, T = 2, 8
    vocab_size, hidden_dim, embedding_dim, features_dim = 64, 32, 32, 16

    key = jax.random.PRNGKey(0)
    kp, kf, kt = jax.random.split(key, 3)

    params = init_params(kp, vocab_size, hidden_dim, embedding_dim, features_dim)
    features = jax.random.normal(kf, (B, features_dim), jnp.float32)
    token_ids = jax.random.randint(kt, (B, T), 0, vocab_size, jnp.int32)
    # pack_padded_sequence requires lengths sorted descending; max length == T so
    # the padded output keeps time dim T.
    lengths = jnp.array([T, 5], dtype=jnp.int32)

    out = features_decoder_forward(params, features, token_ids, lengths)
    jax.block_until_ready(out)
    assert out.shape == (B, T, vocab_size) and out.dtype == jnp.float32
    print("KERNEL_OK")
</pallas_src>

<mosaic_0001>
module attributes {stable_mosaic.version = 11 : i64} {
  func.func @_features_decoder_kernel(%arg0: i32, %arg1: memref<8x16xf32, #tpu.memory_space<vmem>>, %arg2: memref<64x32xf32, #tpu.memory_space<vmem>>, %arg3: memref<8x1xi32, #tpu.memory_space<vmem>>, %arg4: memref<16x128xf32, #tpu.memory_space<vmem>>, %arg5: memref<1x128xf32, #tpu.memory_space<vmem>>, %arg6: memref<32x256xf32, #tpu.memory_space<vmem>>, %arg7: memref<1x256xf32, #tpu.memory_space<vmem>>, %arg8: memref<32x128xf32, #tpu.memory_space<vmem>>, %arg9: memref<32x128xf32, #tpu.memory_space<vmem>>, %arg10: memref<64x64xf32, #tpu.memory_space<vmem>>, %arg11: memref<1x64xf32, #tpu.memory_space<vmem>>, %arg12: memref<64x64xf32, #tpu.memory_space<vmem>>, %arg13: memref<64x256xf32, #tpu.memory_space<vmem>>, %arg14: memref<64x64xf32, #tpu.memory_space<vmem>>) attributes {dimension_semantics = [#tpu.dimension_semantics<arbitrary>], iteration_bounds = array<i64: 1>, scalar_prefetch = 0 : i64, scratch_operands = 2 : i64, tpu.core_type = #tpu.core_type<tc>, window_params = [{pipeline_mode = #tpu.pipeline_mode<synchronous>, transform_indices = @transform_0, window_bounds = array<i64: 8, 16>}, {pipeline_mode = #tpu.pipeline_mode<synchronous>, transform_indices = @transform_1, window_bounds = array<i64: 64, 32>}, {pipeline_mode = #tpu.pipeline_mode<synchronous>, transform_indices = @transform_2, window_bounds = array<i64: 8, 1>}, {pipeline_mode = #tpu.pipeline_mode<synchronous>, transform_indices = @transform_3, window_bounds = array<i64: 16, 128>}, {pipeline_mode = #tpu.pipeline_mode<synchronous>, transform_indices = @transform_4, window_bounds = array<i64: 1, 128>}, {pipeline_mode = #tpu.pipeline_mode<synchronous>, transform_indices = @transform_5, window_bounds = array<i64: 32, 256>}, {pipeline_mode = #tpu.pipeline_mode<synchronous>, transform_indices = @transform_6, window_bounds = array<i64: 1, 256>}, {pipeline_mode = #tpu.pipeline_mode<synchronous>, transform_indices = @transform_7, window_bounds = array<i64: 32, 128>}, {pipeline_mode = #tpu.pipeline_mode<synchronous>, transform_indices = @transform_8, window_bounds = array<i64: 32, 128>}, {transform_indices = @transform_9, window_bounds = array<i64: 64, 64>}, {transform_indices = @transform_10, window_bounds = array<i64: 1, 64>}, {transform_indices = @transform_11, window_bounds = array<i64: 64, 64>}]} {
    %c0_i32 = arith.constant 0 : i32
    %0 = arith.cmpi eq, %arg0, %c0_i32 : i32
    %1 = arith.extui %0 : i1 to i32
    %c0_i32_0 = arith.constant 0 : i32
    %2 = arith.cmpi ne, %1, %c0_i32_0 : i32
    scf.if %2 {
      %c0_8 = arith.constant 0 : index
      %c0_9 = arith.constant 0 : index
      %10 = vector.load %arg1[%c0_8, %c0_9] : memref<8x16xf32, #tpu.memory_space<vmem>>, vector<8x16xf32>
      %11 = arith.mulf %10, %10 : vector<8x16xf32>
      %cst_10 = arith.constant dense<0.000000e+00> : vector<8xf32>
      %12 = vector.multi_reduction <add>, %11, %cst_10 [1] : vector<8x16xf32> to vector<8xf32>
      %13 = vector.shape_cast %12 : vector<8xf32> to vector<8x1xf32>
      %14 = math.sqrt %13 : vector<8x1xf32>
      %cst_11 = arith.constant 9.99999996E-13 : f32
      %15 = vector.broadcast %cst_11 : f32 to vector<8x1xf32>
      %16 = arith.maximumf %14, %15 : vector<8x1xf32>
      %17 = vector.broadcast %16 : vector<8x1xf32> to vector<8x16xf32>
      %18 = arith.divf %10, %17 : vector<8x16xf32>
      %c0_12 = arith.constant 0 : index
      %c0_13 = arith.constant 0 : index
      %19 = vector.load %arg4[%c0_12, %c0_13] : memref<16x128xf32, #tpu.memory_space<vmem>>, vector<16x128xf32>
      %cst_14 = arith.constant dense<0.000000e+00> : vector<8x128xf32>
      %20 = tpu.matmul %18, %19, %cst_14 {dimension_numbers = #tpu.dot_dimension_numbers<[1], [0], [0], [1], [0, 0, 1, 1], [], []>} : vector<8x16xf32>, vector<16x128xf32>, vector<8x128xf32> -> vector<8x128xf32>
      %c0_15 = arith.constant 0 : index
      %c0_16 = arith.constant 0 : index
      %21 = vector.load %arg5[%c0_15, %c0_16] : memref<1x128xf32, #tpu.memory_space<vmem>>, vector<1x128xf32>
      %22 = vector.broadcast %21 : vector<1x128xf32> to vector<8x128xf32>
      %23 = arith.addf %20, %22 : vector<8x128xf32>
      %24 = vector.extract_strided_slice %23 {offsets = [0, 0], sizes = [8, 32], strides = [1, 1]} : vector<8x128xf32> to vector<8x32xf32>
      %25 = arith.negf %24 : vector<8x32xf32>
      %26 = math.exp %25 : vector<8x32xf32>
      %cst_17 = arith.constant 1.000000e+00 : f32
      %27 = vector.broadcast %cst_17 : f32 to vector<8x32xf32>
      %28 = arith.addf %27, %26 : vector<8x32xf32>
      %29 = arith.divf %27, %28 : vector<8x32xf32>
      %30 = vector.extract_strided_slice %23 {offsets = [0, 64], sizes = [8, 32], strides = [1, 1]} : vector<8x128xf32> to vector<8x32xf32>
      %31 = math.tanh %30 : vector<8x32xf32>
      %32 = vector.extract_strided_slice %23 {offsets = [0, 96], sizes = [8, 32], strides = [1, 1]} : vector<8x128xf32> to vector<8x32xf32>
      %33 = arith.negf %32 : vector<8x32xf32>
      %34 = math.exp %33 : vector<8x32xf32>
      %cst_18 = arith.constant 1.000000e+00 : f32
      %35 = vector.broadcast %cst_18 : f32 to vector<8x32xf32>
      %36 = arith.addf %35, %34 : vector<8x32xf32>
      %37 = arith.divf %35, %36 : vector<8x32xf32>
      %38 = arith.mulf %29, %31 : vector<8x32xf32>
      %39 = math.tanh %38 : vector<8x32xf32>
      %40 = arith.mulf %37, %39 : vector<8x32xf32>
      %c0_19 = arith.constant 0 : index
      %c0_20 = arith.constant 0 : index
      %41 = vector.load %arg2[%c0_19, %c0_20] : memref<64x32xf32, #tpu.memory_space<vmem>>, vector<64x32xf32>
      %c0_21 = arith.constant 0 : index
      %c0_22 = arith.constant 0 : index
      %42 = vector.load %arg6[%c0_21, %c0_22] : memref<32x256xf32, #tpu.memory_space<vmem>>, vector<32x256xf32>
      %cst_23 = arith.constant dense<0.000000e+00> : vector<64x256xf32>
      %43 = tpu.matmul %41, %42, %cst_23 {dimension_numbers = #tpu.dot_dimension_numbers<[1], [0], [0], [1], [0, 0, 1, 1], [], []>} : vector<64x32xf32>, vector<32x256xf32>, vector<64x256xf32> -> vector<64x256xf32>
      %c0_24 = arith.constant 0 : index
      %c0_25 = arith.constant 0 : index
      %44 = vector.load %arg7[%c0_24, %c0_25] : memref<1x256xf32, #tpu.memory_space<vmem>>, vector<1x256xf32>
      %45 = vector.broadcast %44 : vector<1x256xf32> to vector<64x256xf32>
      %46 = arith.addf %43, %45 : vector<64x256xf32>
      %c0_26 = arith.constant 0 : index
      %c0_27 = arith.constant 0 : index
      %47 = vector.load %arg13[%c0_26, %c0_27] : memref<64x256xf32, #tpu.memory_space<vmem>>, vector<64x256xf32>
      tpu.vector_store %arg13[%c0_26, %c0_27], %46 {strides = array<i32>} : memref<64x256xf32, #tpu.memory_space<vmem>>, vector<64x256xf32>,
      %c0_28 = arith.constant 0 : index
      %c0_29 = arith.constant 0 : index
      %48 = vector.load %arg3[%c0_28, %c0_29] : memref<8x1xi32, #tpu.memory_space<vmem>>, vector<8x1xi32>
      %c0_i32_30 = arith.constant 0 : i32
      %c8_i32 = arith.constant 8 : i32
      %49 = arith.addi %c0_i32_30, %c8_i32 : i32
      %c1_i32 = arith.constant 1 : i32
      %50:2 = scf.for %arg15 = %c0_i32_30 to %49 step %c1_i32 iter_args(%arg16 = %40, %arg17 = %38) -> (vector<8x32xf32>, vector<8x32xf32>)  : i32 {
        %c8_i32_36 = arith.constant 8 : i32
        %53 = arith.muli %arg15, %c8_i32_36 : i32
        %54 = tpu.assume_multiple %53, 8 : i32
        %55 = arith.index_cast %54 : i32 to index
        %c0_37 = arith.constant 0 : index
        %56 = vector.load %arg13[%55, %c0_37] : memref<64x256xf32, #tpu.memory_space<vmem>>, vector<8x128xf32>
        %c0_38 = arith.constant 0 : index
        %c0_39 = arith.constant 0 : index
        %57 = vector.load %arg8[%c0_38, %c0_39] : memref<32x128xf32, #tpu.memory_space<vmem>>, vector<32x128xf32>
        %cst_40 = arith.constant dense<0.000000e+00> : vector<8x128xf32>
        %58 = tpu.matmul %arg16, %57, %cst_40 {dimension_numbers = #tpu.dot_dimension_numbers<[1], [0], [0], [1], [0, 0, 1, 1], [], []>} : vector<8x32xf32>, vector<32x128xf32>, vector<8x128xf32> -> vector<8x128xf32>
        %59 = arith.addf %56, %58 : vector<8x128xf32>
        %60 = vector.extract_strided_slice %59 {offsets = [0, 0], sizes = [8, 32], strides = [1, 1]} : vector<8x128xf32> to vector<8x32xf32>
        %61 = arith.negf %60 : vector<8x32xf32>
        %62 = math.exp %61 : vector<8x32xf32>
        %cst_41 = arith.constant 1.000000e+00 : f32
        %63 = vector.broadcast %cst_41 : f32 to vector<8x32xf32>
        %64 = arith.addf %63, %62 : vector<8x32xf32>
        %65 = arith.divf %63, %64 : vector<8x32xf32>
        %66 = vector.extract_strided_slice %59 {offsets = [0, 32], sizes = [8, 32], strides = [1, 1]} : vector<8x128xf32> to vector<8x32xf32>
        %67 = arith.negf %66 : vector<8x32xf32>
        %68 = math.exp %67 : vector<8x32xf32>
        %cst_42 = arith.constant 1.000000e+00 : f32
        %69 = vector.broadcast %cst_42 : f32 to vector<8x32xf32>
        %70 = arith.addf %69, %68 : vector<8x32xf32>
        %71 = arith.divf %69, %70 : vector<8x32xf32>
        %72 = vector.extract_strided_slice %59 {offsets = [0, 64], sizes = [8, 32], strides = [1, 1]} : vector<8x128xf32> to vector<8x32xf32>
        %73 = math.tanh %72 : vector<8x32xf32>
        %74 = vector.extract_strided_slice %59 {offsets = [0, 96], sizes = [8, 32], strides = [1, 1]} : vector<8x128xf32> to vector<8x32xf32>
        %75 = arith.negf %74 : vector<8x32xf32>
        %76 = math.exp %75 : vector<8x32xf32>
        %cst_43 = arith.constant 1.000000e+00 : f32
        %77 = vector.broadcast %cst_43 : f32 to vector<8x32xf32>
        %78 = arith.addf %77, %76 : vector<8x32xf32>
        %79 = arith.divf %77, %78 : vector<8x32xf32>
        %80 = arith.mulf %71, %arg17 : vector<8x32xf32>
        %81 = arith.mulf %65, %73 : vector<8x32xf32>
        %82 = arith.addf %80, %81 : vector<8x32xf32>
        %83 = math.tanh %82 : vector<8x32xf32>
        %84 = arith.mulf %79, %83 : vector<8x32xf32>
        %85 = vector.broadcast %arg15 : i32 to vector<8x1xi32>
        %86 = arith.cmpi sgt, %48, %85 : vector<8x1xi32>
        %87 = arith.extui %86 : vector<8x1xi1> to vector<8x1xi32>
        %88 = arith.sitofp %87 : vector<8x1xi32> to vector<8x1xf32>
        %89 = vector.broadcast %88 : vector<8x1xf32> to vector<8x32xf32>
        %90 = arith.mulf %84, %89 : vector<8x32xf32>
        %91 = arith.index_cast %54 : i32 to index
        %c0_44 = arith.constant 0 : index
        %92 = vector.load %arg14[%91, %c0_44] : memref<64x64xf32, #tpu.memory_space<vmem>>, vector<8x32xf32>
        tpu.vector_store %arg14[%91, %c0_44], %90 {strides = array<i32>} : memref<64x64xf32, #tpu.memory_space<vmem>>, vector<8x32xf32>,
        scf.yield %84, %82 : vector<8x32xf32>, vector<8x32xf32>
      }
      %c8_i32_31 = arith.constant 8 : i32
      %c0_i32_32 = arith.constant 0 : i32
      %c8_i32_33 = arith.constant 8 : i32
      %51 = arith.addi %c0_i32_32, %c8_i32_33 : i32
      %c1_i32_34 = arith.constant 1 : i32
      %52:2 = scf.for %arg15 = %c0_i32_32 to %51 step %c1_i32_34 iter_args(%arg16 = %40, %arg17 = %38) -> (vector<8x32xf32>, vector<8x32xf32>)  : i32 {
        %c7_i32 = arith.constant 7 : i32
        %53 = arith.subi %c7_i32, %arg15 : i32
        %c8_i32_36 = arith.constant 8 : i32
        %54 = arith.muli %53, %c8_i32_36 : i32
        %55 = tpu.assume_multiple %54, 8 : i32
        %56 = arith.index_cast %55 : i32 to index
        %c128 = arith.constant 128 : index
        %57 = vector.load %arg13[%56, %c128] : memref<64x256xf32, #tpu.memory_space<vmem>>, vector<8x128xf32>
        %c0_37 = arith.constant 0 : index
        %c0_38 = arith.constant 0 : index
        %58 = vector.load %arg9[%c0_37, %c0_38] : memref<32x128xf32, #tpu.memory_space<vmem>>, vector<32x128xf32>
        %cst_39 = arith.constant dense<0.000000e+00> : vector<8x128xf32>
        %59 = tpu.matmul %arg16, %58, %cst_39 {dimension_numbers = #tpu.dot_dimension_numbers<[1], [0], [0], [1], [0, 0, 1, 1], [], []>} : vector<8x32xf32>, vector<32x128xf32>, vector<8x128xf32> -> vector<8x128xf32>
        %60 = arith.addf %57, %59 : vector<8x128xf32>
        %61 = vector.extract_strided_slice %60 {offsets = [0, 0], sizes = [8, 32], strides = [1, 1]} : vector<8x128xf32> to vector<8x32xf32>
        %62 = arith.negf %61 : vector<8x32xf32>
        %63 = math.exp %62 : vector<8x32xf32>
        %cst_40 = arith.constant 1.000000e+00 : f32
        %64 = vector.broadcast %cst_40 : f32 to vector<8x32xf32>
        %65 = arith.addf %64, %63 : vector<8x32xf32>
        %66 = arith.divf %64, %65 : vector<8x32xf32>
        %67 = vector.extract_strided_slice %60 {offsets = [0, 32], sizes = [8, 32], strides = [1, 1]} : vector<8x128xf32> to vector<8x32xf32>
        %68 = arith.negf %67 : vector<8x32xf32>
        %69 = math.exp %68 : vector<8x32xf32>
        %cst_41 = arith.constant 1.000000e+00 : f32
        %70 = vector.broadcast %cst_41 : f32 to vector<8x32xf32>
        %71 = arith.addf %70, %69 : vector<8x32xf32>
        %72 = arith.divf %70, %71 : vector<8x32xf32>
        %73 = vector.extract_strided_slice %60 {offsets = [0, 64], sizes = [8, 32], strides = [1, 1]} : vector<8x128xf32> to vector<8x32xf32>
        %74 = math.tanh %73 : vector<8x32xf32>
        %75 = vector.extract_strided_slice %60 {offsets = [0, 96], sizes = [8, 32], strides = [1, 1]} : vector<8x128xf32> to vector<8x32xf32>
        %76 = arith.negf %75 : vector<8x32xf32>
        %77 = math.exp %76 : vector<8x32xf32>
        %cst_42 = arith.constant 1.000000e+00 : f32
        %78 = vector.broadcast %cst_42 : f32 to vector<8x32xf32>
        %79 = arith.addf %78, %77 : vector<8x32xf32>
        %80 = arith.divf %78, %79 : vector<8x32xf32>
        %81 = arith.mulf %72, %arg17 : vector<8x32xf32>
        %82 = arith.mulf %66, %74 : vector<8x32xf32>
        %83 = arith.addf %81, %82 : vector<8x32xf32>
        %84 = math.tanh %83 : vector<8x32xf32>
        %85 = arith.mulf %80, %84 : vector<8x32xf32>
        %86 = vector.broadcast %53 : i32 to vector<8x1xi32>
        %87 = arith.cmpi sgt, %48, %86 : vector<8x1xi32>
        %88 = arith.extui %87 : vector<8x1xi1> to vector<8x1xi32>
        %89 = arith.sitofp %88 : vector<8x1xi32> to vector<8x1xf32>
        %90 = vector.broadcast %89 : vector<8x1xf32> to vector<8x32xf32>
        %91 = arith.mulf %85, %90 : vector<8x32xf32>
        %92 = arith.index_cast %55 : i32 to index
        %c32 = arith.constant 32 : index
        %93 = vector.load %arg14[%92, %c32] : memref<64x64xf32, #tpu.memory_space<vmem>>, vector<8x32xf32>
        tpu.vector_store %arg14[%92, %c32], %91 {strides = array<i32>} : memref<64x64xf32, #tpu.memory_space<vmem>>, vector<8x32xf32>,
        %94 = vector.broadcast %89 : vector<8x1xf32> to vector<8x32xf32>
        %95 = arith.mulf %94, %85 : vector<8x32xf32>
        %cst_43 = arith.constant 1.000000e+00 : f32
        %96 = vector.broadcast %cst_43 : f32 to vector<8x1xf32>
        %97 = arith.subf %96, %89 : vector<8x1xf32>
        %98 = vector.broadcast %97 : vector<8x1xf32> to vector<8x32xf32>
        %99 = arith.mulf %98, %arg16 : vector<8x32xf32>
        %100 = arith.addf %95, %99 : vector<8x32xf32>
        %101 = vector.broadcast %89 : vector<8x1xf32> to vector<8x32xf32>
        %102 = arith.mulf %101, %83 : vector<8x32xf32>
        %cst_44 = arith.constant 1.000000e+00 : f32
        %103 = vector.broadcast %cst_44 : f32 to vector<8x1xf32>
        %104 = arith.subf %103, %89 : vector<8x1xf32>
        %105 = vector.broadcast %104 : vector<8x1xf32> to vector<8x32xf32>
        %106 = arith.mulf %105, %arg17 : vector<8x32xf32>
        %107 = arith.addf %102, %106 : vector<8x32xf32>
        scf.yield %100, %107 : vector<8x32xf32>, vector<8x32xf32>
      }
      %c8_i32_35 = arith.constant 8 : i32
    } else {
    }
    %c0 = arith.constant 0 : index
    %c0_1 = arith.constant 0 : index
    %3 = vector.load %arg14[%c0, %c0_1] : memref<64x64xf32, #tpu.memory_space<vmem>>, vector<64x64xf32>
    %c0_2 = arith.constant 0 : index
    %c0_3 = arith.constant 0 : index
    %4 = vector.load %arg10[%c0_2, %c0_3] : memref<64x64xf32, #tpu.memory_space<vmem>>, vector<64x64xf32>
    %cst = arith.constant dense<0.000000e+00> : vector<64x64xf32>
    %5 = tpu.matmul %3, %4, %cst {dimension_numbers = #tpu.dot_dimension_numbers<[1], [0], [0], [1], [0, 0, 1, 1], [], []>} : vector<64x64xf32>, vector<64x64xf32>, vector<64x64xf32> -> vector<64x64xf32>
    %c0_4 = arith.constant 0 : index
    %c0_5 = arith.constant 0 : index
    %6 = vector.load %arg11[%c0_4, %c0_5] : memref<1x64xf32, #tpu.memory_space<vmem>>, vector<1x64xf32>
    %7 = vector.broadcast %6 : vector<1x64xf32> to vector<64x64xf32>
    %8 = arith.addf %5, %7 : vector<64x64xf32>
    %c0_6 = arith.constant 0 : index
    %c0_7 = arith.constant 0 : index
    %9 = vector.load %arg12[%c0_6, %c0_7] : memref<64x64xf32, #tpu.memory_space<vmem>>, vector<64x64xf32>
    tpu.vector_store %arg12[%c0_6, %c0_7], %8 {strides = array<i32>} : memref<64x64xf32, #tpu.memory_space<vmem>>, vector<64x64xf32>,
    return
  }
  func.func @transform_0(%arg0: i32) -> (i32, i32) {
    %c0_i32 = arith.constant 0 : i32
    %c0_i32_0 = arith.constant 0 : i32
    %c0_i32_1 = arith.constant 0 : i32
    return %c0_i32, %c0_i32_0 : i32, i32
  }
  func.func @transform_1(%arg0: i32) -> (i32, i32) {
    %c0_i32 = arith.constant 0 : i32
    %c0_i32_0 = arith.constant 0 : i32
    %c0_i32_1 = arith.constant 0 : i32
    return %c0_i32, %c0_i32_0 : i32, i32
  }
  func.func @transform_2(%arg0: i32) -> (i32, i32) {
    %c0_i32 = arith.constant 0 : i32
    %c0_i32_0 = arith.constant 0 : i32
    %c0_i32_1 = arith.constant 0 : i32
    return %c0_i32, %c0_i32_0 : i32, i32
  }
  func.func @transform_3(%arg0: i32) -> (i32, i32) {
    %c0_i32 = arith.constant 0 : i32
    %c0_i32_0 = arith.constant 0 : i32
    %c0_i32_1 = arith.constant 0 : i32
    return %c0_i32, %c0_i32_0 : i32, i32
  }
  func.func @transform_4(%arg0: i32) -> (i32, i32) {
    %c0_i32 = arith.constant 0 : i32
    %c0_i32_0 = arith.constant 0 : i32
    %c0_i32_1 = arith.constant 0 : i32
    return %c0_i32, %c0_i32_0 : i32, i32
  }
  func.func @transform_5(%arg0: i32) -> (i32, i32) {
    %c0_i32 = arith.constant 0 : i32
    %c0_i32_0 = arith.constant 0 : i32
    %c0_i32_1 = arith.constant 0 : i32
    return %c0_i32, %c0_i32_0 : i32, i32
  }
  func.func @transform_6(%arg0: i32) -> (i32, i32) {
    %c0_i32 = arith.constant 0 : i32
    %c0_i32_0 = arith.constant 0 : i32
    %c0_i32_1 = arith.constant 0 : i32
    return %c0_i32, %c0_i32_0 : i32, i32
  }
  func.func @transform_7(%arg0: i32) -> (i32, i32) {
    %c0_i32 = arith.constant 0 : i32
    %c0_i32_0 = arith.constant 0 : i32
    %c0_i32_1 = arith.constant 0 : i32
    return %c0_i32, %c0_i32_0 : i32, i32
  }
  func.func @transform_8(%arg0: i32) -> (i32, i32) {
    %c0_i32 = arith.constant 0 : i32
    %c0_i32_0 = arith.constant 0 : i32
    %c0_i32_1 = arith.constant 0 : i32
    return %c0_i32, %c0_i32_0 : i32, i32
  }
  func.func @transform_9(%arg0: i32) -> (i32, i32) {
    %c0_i32 = arith.constant 0 : i32
    %c0_i32_0 = arith.constant 0 : i32
    return %c0_i32, %arg0 : i32, i32
  }
  func.func @transform_10(%arg0: i32) -> (i32, i32) {
    %c0_i32 = arith.constant 0 : i32
    %c0_i32_0 = arith.constant 0 : i32
    return %c0_i32, %arg0 : i32, i32
  }
  func.func @transform_11(%arg0: i32) -> (i32, i32) {
    %c0_i32 = arith.constant 0 : i32
    %c0_i32_0 = arith.constant 0 : i32
    return %c0_i32, %arg0 : i32, i32
  }
}

</mosaic_0001>

<bundles_post_ra>
// kernel: tpu_custom_call.1
= control target key start
LH: loop header
LB: loop body
LE: loop exit
PB: predicated region body
PF: predicated region fallthrough
CT: control target
= control target key end

     0   :  { %16 = vsyncpa [#allocation5], 0  ;;  %s1696_s0 = inlined_call_operand.hbm [shape: f32[8,16], index: 0, kind: input, shape index: {}]   ;;  %s1697_s1 = inlined_call_operand.vmem [shape: f32[64,32], index: 1, kind: input, shape index: {}]   ;;  %s1698_s2 = inlined_call_operand.vmem [shape: s32[8,1], index: 2, kind: input, shape index: {}]   ;;  %s1699_s3 = inlined_call_operand.hbm [shape: f32[16,128], index: 3, kind: input, shape index: {}]   ;;  %s1700_s4 = inlined_call_operand.vmem [shape: f32[1,128], index: 4, kind: input, shape index: {}]   ;;  %s1701_s5 = inlined_call_operand.vmem [shape: f32[32,256], index: 5, kind: input, shape index: {}]   ;;  %s1702_s6 = inlined_call_operand.vmem [shape: f32[1,256], index: 6, kind: input, shape index: {}]   ;;  %s1703_s7 = inlined_call_operand.hbm [shape: f32[32,128], index: 7, kind: input, shape index: {}]   ;;  %s1704_s8 = inlined_call_operand.hbm [shape: f32[32,128], index: 8, kind: input, shape index: {}]   ;;  %s1705_s9 = inlined_call_operand.vmem [shape: f32[64,64], index: 9, kind: input, shape index: {}]   ;;  %s1706_s10 = inlined_call_operand.vmem [shape: f32[1,64], index: 10, kind: input, shape index: {}]   ;;  %s1707_s11 = inlined_call_operand.hbm [shape: f32[64,64], index: 11, kind: output, shape index: {}]  }
   0x1   :  { %17 = vsyncpa [#allocation8], 0 }
   0x2   :  { %18 = vsyncpa [#allocation11], 0 }
   0x3   :  { %19 = vsyncpa [#allocation6], 0  ;;  %s1350_s17 = smov [#allocation7]   ;;  %s1184_s21 = scalar_lea.hbm %s1699_s3, 256 }
   0x4   :  { %s39_s18 = sshll.u32 %s1350_s17, 4  ;;  %p1185_p0 = scmp.ne.s32.totalorder %s1699_s3, %s1184_s21  ;;  %s40_s18 = int_to_ptr.vmem [resolvable:$true] %s39_s18 }
   0x5   :  { %p1188_p1 = scmp.lt.u32.totalorder %s1184_s21, %s1699_s3 }
   0x7   :  { %p1190_p2 = pnand %p1188_p1, %p1185_p0 }
   0x9   :  { %1193 = shalt.err (!%p1190_p2)
}
   0xa   :  { %s1194_s26 = scalar_lea.vmem %s40_s18, 256  ;;  %p1199_p4 = scmp.lt.s32.totalorder %s40_s18, %s40_s18 }
   0xb   :  { %p1195_p3 = scmp.ne.s32.totalorder %s40_s18, %s1194_s26  ;;  %p1200_p5 = scmp.lt.s32.totalorder %s1194_s26, %s1194_s26 }
   0xd   :  { %p1201_p6 = por %p1200_p5, %p1199_p4 }
   0xf   :  { %p1202_p7 = pnand %p1201_p6, %p1195_p3 }
  0x11   :  { %1205 = shalt.err (!%p1202_p7)
}
  0x12   :  { %s1351_s27 = smov 128   ;;  %s1352_s28 = smov 8  }
  0x13   :  { %45 = dma.hbm_to_vmem [thread:$0]  %s1699_s3, 256, %s40_s18, [#allocation8], %s1351_s27, %s1351_s27, %s1352_s28  }
  0x14   :  { %s1353_s12 = smov [#allocation4]   ;;  %s1354_s14 = smov [#allocation9]  }
  0x15   :  { %s26_s13 = sshll.u32 %s1353_s12, 4  ;;  %s57_s15 = sshll.u32 %s1354_s14, 4  ;;  %s27_s13 = int_to_ptr.vmem [resolvable:$true] %s26_s13  ;;  %s58_s15 = int_to_ptr.vmem [resolvable:$true] %s57_s15 }
  0x16   :  { %s1206_s19 = scalar_lea.hbm %s1696_s0, 128 }
  0x17   :  { %p1207_p8 = scmp.ne.s32.totalorder %s1696_s0, %s1206_s19  ;;  %p1210_p9 = scmp.lt.u32.totalorder %s1206_s19, %s1696_s0 }
  0x19   :  { %p1212_p10 = pnand %p1210_p9, %p1207_p8 }
  0x1b   :  { %1215 = shalt.err (!%p1212_p10)
}
  0x1c   :  { %s1216_s3 = scalar_lea.vmem %s27_s13, 128  ;;  %p1221_p12 = scmp.lt.s32.totalorder %s27_s13, %s27_s13 }
  0x1d   :  { %p1217_p11 = scmp.ne.s32.totalorder %s27_s13, %s1216_s3  ;;  %p1222_p13 = scmp.lt.s32.totalorder %s1216_s3, %s1216_s3 }
  0x1f   :  { %p1223_p0 = por %p1222_p13, %p1221_p12 }
  0x21   :  { %p1224_p1 = pnand %p1223_p0, %p1217_p11 }
  0x23   :  { %1227 = shalt.err (!%p1224_p1)
}
  0x24   :  { %29 = dma.hbm_to_vmem [thread:$0]  %s1696_s0, 128, %s27_s13, [#allocation5]  }
  0x25   :  { %s1228_s29 = scalar_lea.hbm %s1703_s7, 512 }
  0x26   :  { %p1229_p2 = scmp.ne.s32.totalorder %s1703_s7, %s1228_s29  ;;  %p1232_p3 = scmp.lt.u32.totalorder %s1228_s29, %s1703_s7 }
  0x28   :  { %p1234_p4 = pnand %p1232_p3, %p1229_p2 }
  0x2a   :  { %1237 = shalt.err (!%p1234_p4)
}
  0x2b   :  { %s1238_s17 = scalar_lea.vmem %s58_s15, 512  ;;  %p1243_p6 = scmp.lt.s32.totalorder %s58_s15, %s58_s15 }
  0x2c   :  { %p1239_p5 = scmp.ne.s32.totalorder %s58_s15, %s1238_s17  ;;  %p1244_p7 = scmp.lt.s32.totalorder %s1238_s17, %s1238_s17 }
  0x2e   :  { %p1245_p8 = por %p1244_p7, %p1243_p6 }
  0x30   :  { %p1246_p9 = pnand %p1245_p8, %p1239_p5 }
  0x32   :  { %1249 = shalt.err (!%p1246_p9)
}
  0x33   :  { %63 = dma.hbm_to_vmem [thread:$0]  %s1703_s7, 512, %s58_s15, [#allocation8], %s1351_s27, %s1351_s27, %s1352_s28  }
  0x34   :  { %s1355_s19 = smov [#allocation10]   ;;  %s1250_s23 = scalar_lea.hbm %s1704_s8, 512 }
  0x35   :  { %s69_s20 = sshll.u32 %s1355_s19, 4  ;;  %p1251_p10 = scmp.ne.s32.totalorder %s1704_s8, %s1250_s23  ;;  %s70_s20 = int_to_ptr.vmem [resolvable:$true] %s69_s20 }
  0x36   :  { %p1254_p11 = scmp.lt.u32.totalorder %s1250_s23, %s1704_s8 }
  0x38   :  { %p1256_p12 = pnand %p1254_p11, %p1251_p10 }
  0x3a   :  { %1259 = shalt.err (!%p1256_p12)
}
  0x3b   :  { %s1260_s26 = scalar_lea.vmem %s70_s20, 512  ;;  %p1265_p0 = scmp.lt.s32.totalorder %s70_s20, %s70_s20 }
  0x3c   :  { %p1261_p13 = scmp.ne.s32.totalorder %s70_s20, %s1260_s26  ;;  %p1266_p1 = scmp.lt.s32.totalorder %s1260_s26, %s1260_s26 }
  0x3e   :  { %p1267_p2 = por %p1266_p1, %p1265_p0 }
  0x40   :  { %p1268_p3 = pnand %p1267_p2, %p1261_p13 }
  0x42   :  { %1271 = shalt.err (!%p1268_p3)
}
  0x43   :  { %75 = dma.hbm_to_vmem [thread:$0]  %s1704_s8, 512, %s70_s20, [#allocation11], %s1351_s27, %s1351_s27, %s1352_s28  }
  0x44   :  { %1318 = dma.done.wait [#allocation5], 128  }
  0x45   :  { %1319 = vsyncadd [#allocation5], 4294967168 }
  0x46   :  { %1320 = dma.done.wait [#allocation8], 768  }
  0x47   :  { %1321 = vsyncadd [#allocation8], 4294966528 }
  0x48   :  { %1322 = dma.done.wait [#allocation11], 512  }
  0x49   :  { %1323 = vsyncadd [#allocation11], 4294966784  ;;  %v1496_v0 = vld [vmem:[%s1698_s2] sm:$0xff]  ;;  %vm98_vm0 = vcmask 130048   ;;  %v112_v4 = vld [vmem:[#allocation7] sm:$0xff]  ;;  %v1356_v6 = vmov 0.0|0.0   ;;  %v230_v43 = vlaneseq }
  0x4a   :  { %v96_v1 = vld [vmem:[#allocation4] sm:$0xff]  ;;  %v113_v5 = vld [vmem:[#allocation7 + $0x8] sm:$0xff]  ;;  %1028 = vmatprep.subr.bf16.mxu0 %v1356_v6  ;;  %vm1357_vm1 = vmmov 0   ;;  %v1358_v8 = vmov 0.0   ;;  %v221_v18 = vld [vmem:[%s1701_s5 + $0x8] sm:$0xff]  ;;  %vm240_vm4 = vcmask 261120  }
  0x4b   :  { %v97_v2 = vmul.f32 %v96_v1, %v96_v1  ;;  %v1029_v7 = vpack.c.bf16 %v113_v5, %v112_v4  ;;  %975 = vmatprep.mubr.msk.f32.mxu0 %vm1357_vm1, %v1358_v8  ;;  %347 = vmatprep.mubr.f32.mxu1 %v1358_v8  ;;  %v223_v19 = vld [vmem:[%s1701_s5 + $0x18] sm:$0xff]  ;;  %v220_v21 = vld [vmem:[%s1701_s5] sm:$0xff]  ;;  %v222_v22 = vld [vmem:[%s1701_s5 + $0x10] sm:$0xff]  ;;  %s1359_s22 = smov 64   ;;  %v231_v45 = vshrl.u32 %v230_v43, 7 }
  0x4c   :  { %v1031_v20 = vpack.c.bf16 %v223_v19, %v221_v18  ;;  %v1033_v23 = vpack.c.bf16 %v222_v22, %v220_v21  ;;  %v225_v24 = vld [vmem:[%s1701_s5 + $0x28] sm:$0xff]  ;;  %v227_v25 = vld [vmem:[%s1701_s5 + $0x38] sm:$0xff]  ;;  %v224_v26 = vld [vmem:[%s1701_s5 + $0x20] sm:$0xff] }
  0x4d   :  { %v99_v3 = vsel %vm98_vm0, %v97_v2, 0.0  ;;  %1030 = vmatpush3.bf16.msra.mxu0 %v1029_v7  ;;  %v1035_v27 = vpack.c.bf16 %v227_v25, %v225_v24  ;;  %v226_v28 = vld [vmem:[%s1701_s5 + $0x30] sm:$0xff]  ;;  %v215_v30 = vld [vmem:[%s1697_s1 + $0x18] sm:$0xff]  ;;  %v212_v31 = vld [vmem:[%s1697_s1] sm:$0xff]  ;;  %v232_v46 = vsub.s32 0, %v231_v45  ;;  %v236_v48 = vsub.s32 1, %v231_v45 }
  0x4e   :  { %100 = vadd.xlane.f32.xlu0 %v99_v3  ;;  %1067 = vmatprep.subr.bf16.mxu1 %v1031_v20  ;;  %v1037_v29 = vpack.c.bf16 %v226_v28, %v224_v26  ;;  %v216_v32 = vld [vmem:[%s1697_s1 + $0x20] sm:$0xff]  ;;  %v213_v33 = vld [vmem:[%s1697_s1 + $0x8] sm:$0xff]  ;;  %v214_v35 = vld [vmem:[%s1697_s1 + $0x10] sm:$0xff] }
  0x4f   :  { %1032 = vmatprep.subr.bf16.mxu0 %v1031_v20  ;;  %1069 = vmatpush1.bf16.msra.mxu1 %v1033_v23  ;;  %v217_v34 = vld [vmem:[%s1697_s1 + $0x28] sm:$0xff]  ;;  %v218_v36 = vld [vmem:[%s1697_s1 + $0x30] sm:$0xff]  ;;  %v219_v37 = vld [vmem:[%s1697_s1 + $0x38] sm:$0xff] }
  0x50   :  { %1068 = vmatprep.subr.bf16.mxu1 %v1035_v27  ;;  %v908_v38 = vld [vmem:[%s1700_s4] ss:$0 sm:$0xff]  ;;  %s1360_s4 = smov 96  }
  0x51   :  { %v228_v47 = vld [vmem:[%s1702_s6] sm:$0x3]  ;;  %s1573_s6 = smov 0  }
  0x52   :  { %v233_v49 = vrot.slane %v228_v47, %v232_v46  ;;  %v237_v50 = vrot.slane %v228_v47, %v236_v48 }
  0x53   :  { %1070 = vmatpush1.bf16.msra.mxu1 %v1037_v29 }
  0x56   :  { %914 = vmatmul.mubr.msk.f32.vlgmr.msra.gmra.mrb[0].mxu1 %vm240_vm4, %v215_v30 }
  0x57   :  { %353 = vmatprep.mubr.f32.mxu1 %v1358_v8 }
  0x5a   :  { %915 = vmatmul.mubr.msk.f32.gmra.mrb[2].mxu1 %vm240_vm4, %v216_v32 }
  0x5b   :  { %359 = vmatprep.mubr.f32.mxu1 %v1358_v8 }
  0x5e   :  { %916 = vmatmul.mubr.msk.f32.gmra.mrb[4].mxu1 %vm240_vm4, %v217_v34 }
  0x5f   :  { %365 = vmatprep.mubr.f32.mxu1 %v1358_v8 }
  0x62   :  { %917 = vmatmul.mubr.msk.f32.gmra.mrb[6].mxu1 %vm240_vm4, %v218_v36 }
  0x63   :  { %371 = vmatprep.mubr.f32.mxu1 %v1358_v8 }
  0x66   :  { %918 = vmatmul.mubr.msk.f32.gmra.mrb[8].mxu1 %vm240_vm4, %v219_v37 }
  0xdb   :  { %v101_v9 = vpop.xlane.xlu0 %100 }
  0xdc   :  { %1153 = vrsqrt.f32 %v101_v9  ;;  %vm104_vm2 = vcmp.eq.f32.partialorder %v101_v9, inf  ;;  %v107_v12 = vand.u32 2147483648, %v101_v9  ;;  %vm106_vm3 = vcmp.eq.f32.partialorder %v101_v9, 0.0 }
  0xe6   :  { %v1154_v10 = vpop.eup %1153 }
  0xe7   :  { %v103_v11 = vmul.f32 %v1154_v10, %v101_v9 }
  0xe9   :  { %v105_v13 = vsel %vm104_vm2, %v101_v9, %v103_v11 }
  0xea   :  { %v108_v14 = vsel %vm106_vm3, %v107_v12, %v105_v13 }
  0xeb   :  { %v109_v15 = vmax.f32 %v108_v14, 1e-12 }
  0xed   :  { %1155 = vrcp.f32 %v109_v15 }
  0xf7   :  { %v1156_v16 = vpop.eup %1155 }
  0xf8   :  { %v111_v17 = vmul.f32 %v1156_v16, %v96_v1 }
  0xfa   :  { %976 = vmatmul.mubr.msk.f32.vlgmr.msra.gmra.mrb[0].mxu0 %vm98_vm0, %v111_v17 }
  0xfb   :  { %329 = vmatprep.mubr.f32.mxu0 %v1358_v8  ;;  %1034 = vmatpush1.bf16.msra.mxu0 %v1033_v23 }
  0xfc   :  { %1036 = vmatprep.subr.bf16.mxu0 %v1035_v27 }
  0xff   :  { %1038 = vmatpush1.bf16.msra.mxu0 %v1037_v29 }
 0x102   :  { %911 = vmatmul.mubr.msk.f32.vlgmr.msra.gmra.mrb[2].mxu0 %vm240_vm4, %v212_v31 }
 0x103   :  { %335 = vmatprep.mubr.f32.mxu0 %v1358_v8 }
 0x106   :  { %912 = vmatmul.mubr.msk.f32.gmra.mrb[4].mxu0 %vm240_vm4, %v213_v33 }
 0x107   :  { %341 = vmatprep.mubr.f32.mxu0 %v1358_v8 }
 0x10a   :  { %913 = vmatmul.mubr.msk.f32.gmra.mrb[6].mxu0 %vm240_vm4, %v214_v35 }
 0x129   :  { %v349_v51 = vpop.f32.mrb[0].mxu1 }
 0x12a   :  { %v350_v53 = vadd.f32 %v349_v51, %v233_v49  ;;  %v351_v54 = vpop.f32.mrb[1].mxu1 }
 0x12b   :  { %v352_v57 = vadd.f32 %v351_v54, %v237_v50 }
 0x12c   :  { %384 = vst [vmem:[#allocation2 + $0x30] sm:$0xff] %v350_v53 }
 0x12d   :  { %385 = vst [vmem:[#allocation2 + $0x38] sm:$0xff] %v352_v57  ;;  %v355_v60 = vpop.f32.mrb[2].mxu1 }
 0x12e   :  { %v356_v62 = vadd.f32 %v355_v60, %v233_v49  ;;  %v357_v63 = vpop.f32.mrb[3].mxu1 }
 0x12f   :  { %v358_v4 = vadd.f32 %v357_v63, %v237_v50 }
 0x130   :  { %386 = vst [vmem:[#allocation2 + $0x40] sm:$0xff] %v356_v62 }
 0x131   :  { %387 = vst [vmem:[#allocation2 + $0x48] sm:$0xff] %v358_v4  ;;  %v361_v6 = vpop.f32.mrb[4].mxu1 }
 0x132   :  { %v362_v8 = vadd.f32 %v361_v6, %v233_v49  ;;  %v363_v9 = vpop.f32.mrb[5].mxu1 }
 0x133   :  { %v364_v12 = vadd.f32 %v363_v9, %v237_v50 }
 0x134   :  { %388 = vst [vmem:[#allocation2 + $0x50] sm:$0xff] %v362_v8 }
 0x135   :  { %389 = vst [vmem:[#allocation2 + $0x58] sm:$0xff] %v364_v12  ;;  %v367_v14 = vpop.f32.mrb[6].mxu1 }
 0x136   :  { %v368_v15 = vadd.f32 %v367_v14, %v233_v49  ;;  %v369_v16 = vpop.f32.mrb[7].mxu1 }
 0x137   :  { %v370_v17 = vadd.f32 %v369_v16, %v237_v50 }
 0x138   :  { %390 = vst [vmem:[#allocation2 + $0x60] sm:$0xff] %v368_v15 }
 0x139   :  { %391 = vst [vmem:[#allocation2 + $0x68] sm:$0xff] %v370_v17  ;;  %v373_v18 = vpop.f32.mrb[8].mxu1 }
 0x13a   :  { %v374_v19 = vadd.f32 %v373_v18, %v233_v49  ;;  %v375_v20 = vpop.f32.mrb[9].mxu1 }
 0x13b   :  { %v376_v21 = vadd.f32 %v375_v20, %v237_v50 }
 0x13c   :  { %392 = vst [vmem:[#allocation2 + $0x70] sm:$0xff] %v374_v19 }
 0x13d   :  { %393 = vst [vmem:[#allocation2 + $0x78] sm:$0xff] %v376_v21 }
 0x1cd   :  { %v190_v39 = vpop.f32.mrb[0].mxu0 }
 0x1ce   :  { %v191_v40 = vadd.f32 %v908_v38, %v190_v39  ;;  %v977_v41 = vpop.f32.mrb[1].mxu0 }
 0x1d0   :  { %1157 = vtanh.f32 %v191_v40  ;;  %v910_v44 = vmul.f32 -1.442695, %v191_v40 }
 0x1d2   :  { %1159 = vpow2.f32 %v910_v44 }
 0x1d5   :  { %v331_v52 = vpop.f32.mrb[2].mxu0 }
 0x1d6   :  { %v332_v55 = vadd.f32 %v331_v52, %v233_v49  ;;  %v333_v56 = vpop.f32.mrb[3].mxu0 }
 0x1d7   :  { %v334_v58 = vadd.f32 %v333_v56, %v237_v50 }
 0x1d8   :  { %378 = vst [vmem:[#allocation2] sm:$0xff] %v332_v55 }
 0x1d9   :  { %379 = vst [vmem:[#allocation2 + $0x8] sm:$0xff] %v334_v58  ;;  %v337_v61 = vpop.f32.mrb[4].mxu0 }
 0x1da   :  { %v1158_v42 = vpop.eup %1157  ;;  %v338_v1 = vadd.f32 %v337_v61, %v233_v49  ;;  %v339_v2 = vpop.f32.mrb[5].mxu0 }
 0x1db   :  { %202 = vrot.lane.b32.xlu0 %v1158_v42, %s1359_s22  ;;  %v340_v5 = vadd.f32 %v339_v2, %v237_v50 }
 0x1dc   :  { %v1160_v59 = vpop.eup %1159  ;;  %380 = vst [vmem:[#allocation2 + $0x10] sm:$0xff] %v338_v1 }
 0x1dd   :  { %v197_v3 = vadd.f32 1.0, %v1160_v59  ;;  %381 = vst [vmem:[#allocation2 + $0x18] sm:$0xff] %v340_v5  ;;  %v343_v7 = vpop.f32.mrb[6].mxu0 }
 0x1de   :  { %v344_v10 = vadd.f32 %v343_v7, %v233_v49  ;;  %v345_v11 = vpop.f32.mrb[7].mxu0 }
 0x1df   :  { %1161 = vrcp.f32 %v197_v3  ;;  %v346_v13 = vadd.f32 %v345_v11, %v237_v50 }
 0x1e0   :  { %382 = vst [vmem:[#allocation2 + $0x20] sm:$0xff] %v344_v10 }
 0x1e1   :  { %383 = vst [vmem:[#allocation2 + $0x28] sm:$0xff] %v346_v13 }
 0x1e9   :  { %v1162_v22 = vpop.eup %1161 }
 0x24d   :  { %v203_v23 = vpop.permute.xlu0 %202 }
 0x24e   :  { %v1562_v24 = vmul.f32 %v1162_v22, %v203_v23  }
 0x250   :  { %1163 = vtanh.f32 %v1562_v24  ;;  %v1708_v28 = vmov %v1562_v24 }
 0x25a   :  { %v1164_v25 = vpop.eup %1163 }
 0x25b   :  { %208 = vrot.lane.b32.xlu1 %v1164_v25, %s1360_s4 }
 0x2cd   :  { %v209_v26 = vpop.permute.xlu1 %208 }
 0x2ce   :  { %v1565_v27 = vmul.f32 %v1162_v22, %v209_v26  }
 0x2d0   :  { %v1709_v29 = vmov %v1565_v27 }
 0x2d1 LB: > { %v410_v30 = vld [vmem:[#allocation9] sm:$0xff]  ;;  %v411_v31 = vld [vmem:[#allocation9 + $0x8] sm:$0xff]  ;;  %v412_v32 = vld [vmem:[#allocation9 + $0x10] sm:$0xff]  ;;  %v1361_v33 = vmov 0.0|0.0   ;;  %s1362_s3 = smov 32   ;;  %vm1363_vm5 = vmmov 0   ;;  %v518_v44 = vstv %s1336_s6  ;;  %s1336_s6 = sphi %s1573_s6, %s400_s6   ;;  %v1332_v29 = vphi %v1709_v29, %v517_v29   ;;  %v1328_v28 = vphi %v1708_v28, %v536_v28  }
 0x2d2   : > { %1039 = vmatprep.subr.bf16.mxu0 %v1361_v33  ;;  %v1040_v34 = vpack.c.bf16 %v411_v31, %v410_v30  ;;  %v413_v35 = vld [vmem:[#allocation9 + $0x18] sm:$0xff]  ;;  %415 = vrot.lane.b32.xlu0 %v1332_v29, %s1362_s3  ;;  %v1364_v36 = vmov 0.0   ;;  %s919_s18 = sshll.u32 %s1336_s6, 3  ;;  %v1365_v43 = vmov 0   ;;  %vm519_vm6 = vcmp.gt.s32.totalorder %v1496_v0, %v518_v44  ;;  %s1366_s7 = smov 64  }
 0x2d3   : > { %986 = vmatprep.mubr.msk.f32.mxu0 %vm1363_vm5, %v1364_v36  ;;  %v1043_v37 = vpack.c.bf16 %v413_v35, %v412_v32  ;;  %498 = vrot.lane.b32.xlu1 %v1328_v28, %s1362_s3  ;;  %s404_s24 = sshra.s32 %s919_s18, 3  ;;  %v924_v46 = vsel %vm519_vm6, 1.0, %v1364_v36  ;;  %s1367_s15 = smov 96  }
 0x2d4   : > { %1041 = vmatpush3.bf16.msra.mxu0 %v1040_v34  ;;  %s940_s25 = sshll.u32 %s404_s24, 4  ;;  %1165 = vset.pattern.permute.xlu0 %v1365_v43  ;;  %s532_s5 = scalar_lea.vmem [#allocation3], %s919_s18 }
 0x2d5   : > { %1042 = vmatprep.subr.bf16.mxu0 %v1361_v33  ;;  %s408_s26 = scalar_lea.vmem [#allocation2], %s940_s25  ;;  %s400_s6 = sadd.s32 1, %s1336_s6  }
 0x2d6   : > { %v409_v39 = vld [vmem:[%s408_s26] sm:$0xff]  ;;  %p397_p4 = scmp.ge.s32.totalorder %s400_s6, 8  }
 0x2d7   :  { %s1606_s29 = smov (%p397_p4), 0  }
 0x2d8   : > { %1044 = vmatpush3.bf16.msra.mxu0 %v1043_v37 }
 0x344   : > { %v416_v38 = vpop.permute.xlu0 %415 }
 0x345   : > { %987 = vmatmul.mubr.msk.f32.vlgmr.msra.gmra.mrb[0].mxu0 %vm240_vm4, %v416_v38  ;;  %v499_v53 = vpop.permute.xlu1 %498 }
 0x418   : > { %v485_v40 = vpop.f32.mrb[0].mxu0 }
 0x419   : > { %v489_v41 = vadd.f32 %v485_v40, %v409_v39  ;;  %v988_v42 = vpop.f32.mrb[1].mxu0 }
 0x41b   : > { %1166 = vtanh.f32 %v489_v41  ;;  %v923_v47 = vmul.f32 -1.442695, %v489_v41 }
 0x41d   : > { %1168 = vpow2.f32 %v923_v47 }
 0x425   : > { %v1167_v45 = vpop.eup %1166 }
 0x426   : > { %503 = vrot.lane.b32.xlu0 %v1167_v45, %s1366_s7 }
 0x427   : > { %v1169_v48 = vpop.eup %1168 }
 0x428   : > { %v493_v49 = vadd.f32 1.0, %v1169_v48 }
 0x42a   : > { %524 = vperm.xlu0 %1165, %v924_v46   ;;  %1170 = vrcp.f32 %v493_v49 }
 0x434   : > { %v1171_v50 = vpop.eup %1170 }
 0x435   : > { %v501_v54 = vmul.f32 %v1171_v50, %v499_v53 }
 0x498   : > { %v504_v51 = vpop.permute.xlu0 %503 }
 0x499   : > { %v506_v52 = vmul.f32 %v1171_v50, %v504_v51 }
 0x49b   : > { %508 = vrot.lane.b32.xlu1 %v506_v52, %s1362_s3 }
 0x4a9   : > { %v525_v58 = vpop.permute.xlu0 %524 }
 0x50d   : > { %v509_v55 = vpop.permute.xlu1 %508 }
 0x50e   : > { %v511_v56 = vadd.f32 %v509_v55, %v501_v54 }
 0x510   : > { %1172 = vtanh.f32 %v511_v56  ;;  %535 = vrot.lane.b32.xlu0 %v511_v56, %s1367_s15 }
 0x51a   : > { %v1173_v57 = vpop.eup %1172 }
 0x51b   : > { %514 = vrot.lane.b32.xlu1 %v1173_v57, %s1366_s7 }
 0x582   : > { %v536_v28 = vpop.permute.xlu0 %535  }
 0x58d   : > { %v515_v59 = vpop.permute.xlu1 %514 }
 0x58e   : > { %v517_v29 = vmul.f32 %v1171_v50, %v515_v59  }
 0x590   : > { %v527_v60 = vmul.f32 %v525_v58, %v517_v29 }
 0x592   : > { %529 = vrot.lane.b32.xlu1 %v527_v60, %s1362_s3 }
 0x5ff   :  { %399 = sbr.rel (!%p397_p4) target bundleno = 721 (0x2d1), region = 102 }
 0x604   : > { %v530_v61 = vpop.permute.xlu1 %529 }
 0x605   : > { %533 = vst.msk [vmem:[%s532_s5] sm:$0xff] %vm240_vm4, %v530_v61 }
 0x606 LB: > { %v554_v62 = vld [vmem:[#allocation10] sm:$0xff]  ;;  %v555_v63 = vld [vmem:[#allocation10 + $0x8] sm:$0xff]  ;;  %v556_v1 = vld [vmem:[#allocation10 + $0x10] sm:$0xff]  ;;  %v1368_v2 = vmov 0.0|0.0   ;;  %s1369_s30 = smov 32   ;;  %vm1370_vm7 = vmmov 0   ;;  %s1348_s29 = sphi %s1606_s29, %s543_s29   ;;  %v1344_v27 = vphi %v1565_v27, %v686_v27   ;;  %v1340_v24 = vphi %v1562_v24, %v696_v24  }
 0x607   : > { %1045 = vmatprep.subr.bf16.mxu0 %v1368_v2  ;;  %v1046_v3 = vpack.c.bf16 %v555_v63, %v554_v62  ;;  %v557_v4 = vld [vmem:[#allocation10 + $0x18] sm:$0xff]  ;;  %559 = vrot.lane.b32.xlu0 %v1344_v27, %s1369_s30  ;;  %v1371_v5 = vmov 0.0   ;;  %v1372_v8 = vmov 0   ;;  %s546_s2 = ssub.s32 7, %s1348_s29  ;;  %s1373_s17 = smov 64   ;;  %vm677_vm9 = vcmask 523520  }
 0x608   : > { %997 = vmatprep.mubr.msk.f32.mxu0 %vm1370_vm7, %v1371_v5  ;;  %v1049_v6 = vpack.c.bf16 %v557_v4, %v556_v1  ;;  %642 = vrot.lane.b32.xlu1 %v1340_v24, %s1369_s30  ;;  %s1620_s8 = sshll.u32 %s546_s2, 3  ;;  %v662_v13 = vstv %s546_s2  ;;  %s1374_s0 = smov 96  }
 0x609   : > { %1047 = vmatpush3.bf16.msra.mxu0 %v1046_v3  ;;  %1174 = vset.pattern.permute.xlu0 %v1372_v8  ;;  %s548_s12 = sshra.s32 %s1620_s8, 3  ;;  %vm663_vm8 = vcmp.gt.s32.totalorder %v1496_v0, %v662_v13  ;;  %s676_s13 = scalar_lea.vmem [#allocation3], %s1620_s8 }
 0x60a   : > { %1048 = vmatprep.subr.bf16.mxu0 %v1368_v2  ;;  %1175 = vset.pattern.permute.xlu1 %v1372_v8  ;;  %s941_s14 = sshll.u32 %s548_s12, 4  ;;  %v930_v14 = vsel %vm663_vm8, 1.0, %v1371_v5  ;;  %s543_s29 = sadd.s32 1, %s1348_s29  }
 0x60b   : > { %s552_s16 = scalar_lea.vmem [#allocation2], %s941_s14  ;;  %v679_v16 = vsub.f32 1.0, %v930_v14  ;;  %p540_p5 = scmp.ge.s32.totalorder %s543_s29, 8  }
 0x60c   : > { %v553_v9 = vld [vmem:[%s552_s16 + $0x8] sm:$0xff]  ;;  %v706_v40 = vld [vmem:[%s1705_s9] sm:$0xff] (%p540_p5)  ;;  %v708_v42 = vld [vmem:[%s1705_s9 + $0x10] sm:$0xff] (%p540_p5)  ;;  %vm721_vm10 = vcmask (%p540_p5), 523264  }
 0x60d   : > { %1050 = vmatpush3.bf16.msra.mxu0 %v1049_v6  ;;  %v707_v41 = vld [vmem:[%s1705_s9 + $0x8] sm:$0xff] (%p540_p5)  ;;  %v710_v0 = vld [vmem:[%s1705_s9 + $0x20] sm:$0xff] (%p540_p5)  ;;  %v712_v49 = vld [vmem:[%s1705_s9 + $0x30] sm:$0xff] (%p540_p5) }
 0x60e   :  { %v1051_v43 = vpack.c.bf16 (%p540_p5), %v707_v41, %v706_v40  ;;  %v711_v45 = vld [vmem:[%s1705_s9 + $0x28] sm:$0xff] (%p540_p5)  ;;  %v713_v50 = vld [vmem:[%s1705_s9 + $0x38] sm:$0xff] (%p540_p5)  ;;  %v931_v58 = vld [vmem:[%s1706_s10] ss:$0 sm:$0xff] (%p540_p5) }
 0x60f   :  { %v1059_v48 = vpack.c.bf16 (%p540_p5), %v711_v45, %v710_v0  ;;  %v1063_v51 = vpack.c.bf16 (%p540_p5), %v713_v50, %v712_v49 }
 0x610   :  { %1052 = vmatprep.subr.bf16.mxu0 (%p540_p5), %v1051_v43  ;;  %1071 = vmatprep.subr.bf16.mxu1 (%p540_p5), %v1051_v43 }
 0x611   :  { %1075 = vmatpush3.bf16.msra.mxu1 (%p540_p5), %v1051_v43 }
 0x679   : > { %v560_v7 = vpop.permute.xlu0 %559 }
 0x67a   : > { %998 = vmatmul.mubr.msk.f32.vlgmr.msra.gmra.mrb[0].mxu0 %vm240_vm4, %v560_v7  ;;  %v643_v26 = vpop.permute.xlu1 %642 }
 0x67b   :  { %1054 = vmatpush3.bf16.msra.mxu0 (%p540_p5), %v1051_v43 }
 0x74d   : > { %v629_v10 = vpop.f32.mrb[0].mxu0 }
 0x74e   : > { %v633_v11 = vadd.f32 %v629_v10, %v553_v9  ;;  %v999_v12 = vpop.f32.mrb[1].mxu0 }
 0x750   : > { %1176 = vtanh.f32 %v633_v11  ;;  %v929_v17 = vmul.f32 -1.442695, %v633_v11 }
 0x752   : > { %1178 = vpow2.f32 %v929_v17 }
 0x75a   : > { %v1177_v15 = vpop.eup %1176 }
 0x75b   : > { %647 = vrot.lane.b32.xlu0 %v1177_v15, %s1373_s17 }
 0x75c   : > { %v1179_v18 = vpop.eup %1178 }
 0x75d   : > { %v637_v19 = vadd.f32 1.0, %v1179_v18 }
 0x75f   : > { %682 = vperm.xlu0 %1174, %v679_v16   ;;  %1180 = vrcp.f32 %v637_v19 }
 0x769   : > { %v1181_v20 = vpop.eup %1180 }
 0x76a   : > { %v645_v28 = vmul.f32 %v1181_v20, %v643_v26 }
 0x7cd   : > { %v648_v21 = vpop.permute.xlu0 %647 }
 0x7ce   : > { %v650_v22 = vmul.f32 %v1181_v20, %v648_v21 }
 0x7d0   : > { %652 = vrot.lane.b32.xlu1 %v650_v22, %s1369_s30 }
 0x7d4   : > { %668 = vperm.xlu1 %1175, %v930_v14  }
 0x7de   : > { %v683_v23 = vpop.permute.xlu0 %682 }
 0x7df   : > { %v688_v25 = vmul.f32 %v1340_v24, %v683_v23  ;;  %v685_v24 = vmul.f32 %v1344_v27, %v683_v23 }
 0x7e1   : > { %690 = vrot.lane.b32.xlu0 %v688_v25, %s1369_s30  ;;  %s1375_s30 = smov (%p540_p5), [#allocation12]  }
 0x7e2   :  { %s864_s2 = sshll.u32 (%p540_p5), %s1375_s30, 4  ;;  %s865_s2 = int_to_ptr.vmem [resolvable:$true] %s864_s2 }
 0x7e3   :  { %s1272_s10 = scalar_lea.vmem (%p540_p5), %s865_s2, 1024  ;;  %p1277_p7 = scmp.lt.s32.totalorder (%p540_p5), %s865_s2, %s865_s2 }
 0x7e4   :  { %p1273_p6 = scmp.ne.s32.totalorder (%p540_p5), %s865_s2, %s1272_s10  ;;  %p1278_p8 = scmp.lt.s32.totalorder (%p540_p5), %s1272_s10, %s1272_s10 }
 0x7e6   :  { %p1279_p9 = por (%p540_p5), %p1278_p8, %p1277_p7 }
 0x7e8   :  { %p1280_p10 = pnand (%p540_p5), %p1279_p9, %p1273_p6 }
 0x842   : > { %v653_v29 = vpop.permute.xlu1 %652 }
 0x843   : > { %v655_v30 = vadd.f32 %v653_v29, %v645_v28 }
 0x845   : > { %1182 = vtanh.f32 %v655_v30 }
 0x84f   : > { %v1183_v31 = vpop.eup %1182 }
 0x850   : > { %658 = vrot.lane.b32.xlu1 %v1183_v31, %s1373_s17 }
 0x853   : > { %v669_v32 = vpop.permute.xlu1 %668  ;;  %v691_v33 = vpop.permute.xlu0 %690 }
 0x854   : > { %v687_v34 = vmul.f32 %v669_v32, %v655_v30 }
 0x856   : > { %v693_v35 = vadd.f32 %v691_v33, %v687_v34 }
 0x858   : > { %695 = vrot.lane.b32.xlu0 %v693_v35, %s1374_s0 }
 0x8c2   : > { %v659_v36 = vpop.permute.xlu1 %658 }
 0x8c3   : > { %v661_v37 = vmul.f32 %v1181_v20, %v659_v36 }
 0x8c5   : > { %v671_v38 = vmul.f32 %v669_v32, %v661_v37 }
 0x8c7   : > { %v686_v27 = vadd.f32 %v685_v24, %v671_v38   ;;  %673 = vrot.lane.b32.xlu1 %v671_v38, %s1373_s17 }
 0x8c8   :  { %v709_v27 = vld [vmem:[%s1705_s9 + $0x18] sm:$0xff] (%p540_p5) }
 0x8c9   :  { %v1055_v44 = vpack.c.bf16 (%p540_p5), %v709_v27, %v708_v42 }
 0x8ca   : > { %v696_v24 = vpop.permute.xlu0 %695  }
 0x8cb   :  { %1056 = vmatprep.subr.bf16.mxu0 (%p540_p5), %v1055_v44  ;;  %1072 = vmatprep.subr.bf16.mxu1 (%p540_p5), %v1055_v44 }
 0x8cc   :  { %1058 = vmatpush3.bf16.msra.mxu0 (%p540_p5), %v1055_v44  ;;  %1076 = vmatpush3.bf16.msra.mxu1 (%p540_p5), %v1055_v44 }
 0x8cd   :  { %1060 = vmatprep.subr.bf16.mxu0 (%p540_p5), %v1059_v48  ;;  %1073 = vmatprep.subr.bf16.mxu1 (%p540_p5), %v1059_v48 }
 0x8d0   :  { %1062 = vmatpush3.bf16.msra.mxu0 (%p540_p5), %v1059_v48  ;;  %1077 = vmatpush3.bf16.msra.mxu1 (%p540_p5), %v1059_v48 }
 0x8d1   :  { %1064 = vmatprep.subr.bf16.mxu0 (%p540_p5), %v1063_v51  ;;  %1074 = vmatprep.subr.bf16.mxu1 (%p540_p5), %v1063_v51 }
 0x8d4   :  { %1066 = vmatpush3.bf16.msra.mxu0 (%p540_p5), %v1063_v51  ;;  %1078 = vmatpush3.bf16.msra.mxu1 (%p540_p5), %v1063_v51 }
 0x934   :  { %542 = sbr.rel (!%p540_p5) target bundleno = 1542 (0x606), region = 113 }
 0x939   : > { %v674_v39 = vpop.permute.xlu1 %673 }
 0x93a   : > { %678 = vst.msk [vmem:[%s676_s13] sm:$0xff] %vm677_vm9, %v674_v39 }
 0x941   :  { %v698_v46 = vld [vmem:[#allocation3] sm:$0xff]  ;;  %v699_v52 = vld [vmem:[#allocation3 + $0x8] sm:$0xff]  ;;  %v700_v54 = vld [vmem:[#allocation3 + $0x10] sm:$0xff] }
 0x942   :  { %v702_v47 = vld [vmem:[#allocation3 + $0x20] sm:$0xff]  ;;  %1016 = vmatprep.mubr.msk.f32.mxu0 %vm721_vm10, %v698_v46  ;;  %v703_v53 = vld [vmem:[#allocation3 + $0x28] sm:$0xff]  ;;  %v704_v55 = vld [vmem:[#allocation3 + $0x30] sm:$0xff] }
 0x943   :  { %1022 = vmatprep.mubr.msk.f32.mxu1 %vm721_vm10, %v702_v47  ;;  %1017 = vmatmul.mubr.msk.f32.vlgmr.msra.gmra.mrb[0].mxu0 %vm721_vm10, %v699_v52  ;;  %v701_v56 = vld [vmem:[#allocation3 + $0x18] sm:$0xff] }
 0x944   :  { %1023 = vmatmul.mubr.msk.f32.vlgmr.msra.gmra.mrb[0].mxu1 %vm721_vm10, %v703_v53  ;;  %1019 = vmatprep.mubr.msk.f32.mxu0 %vm721_vm10, %v700_v54  ;;  %v705_v57 = vld [vmem:[#allocation3 + $0x38] sm:$0xff] }
 0x945   :  { %1025 = vmatprep.mubr.msk.f32.mxu1 %vm721_vm10, %v704_v55 }
 0x947   :  { %1020 = vmatmul.mubr.msk.f32.gmra.mrb[2].mxu0 %vm721_vm10, %v701_v56 }
 0x948   :  { %1026 = vmatmul.mubr.msk.f32.gmra.mrb[2].mxu1 %vm721_vm10, %v705_v57 }
 0xa16   :  { %v1018_v59 = vpop.f32.mrb[0].mxu0 }
 0xa17   :  { %v1024_v60 = vpop.f32.mrb[0].mxu1  ;;  %v818_v61 = vadd.f32 %v1018_v59, %v931_v58  ;;  %v812_v63 = vpop.f32.mrb[1].mxu0 }
 0xa18   :  { %v838_v62 = vadd.f32 %v1024_v60, %v931_v58  ;;  %v832_v1 = vpop.f32.mrb[1].mxu1  ;;  %v813_v2 = vadd.f32 %v931_v58, %v812_v63 }
 0xa19   :  { %v833_v3 = vadd.f32 %v931_v58, %v832_v1  ;;  %852 = vst.msk [vmem:[#allocation12 + $0x8] sm:$0xff] %vm721_vm10, %v818_v61 }
 0xa1a   :  { %856 = vst.msk [vmem:[#allocation12 + $0x28] sm:$0xff] %vm721_vm10, %v838_v62  ;;  %851 = vst.msk [vmem:[#allocation12] sm:$0xff] %vm721_vm10, %v813_v2  ;;  %v1021_v4 = vpop.f32.mrb[2].mxu0 }
 0xa1b   :  { %855 = vst.msk [vmem:[#allocation12 + $0x20] sm:$0xff] %vm721_vm10, %v833_v3  ;;  %v1027_v5 = vpop.f32.mrb[2].mxu1  ;;  %v828_v6 = vadd.f32 %v1021_v4, %v931_v58  ;;  %v822_v8 = vpop.f32.mrb[3].mxu0 }
 0xa1c   :  { %v848_v7 = vadd.f32 %v1027_v5, %v931_v58  ;;  %v842_v9 = vpop.f32.mrb[3].mxu1  ;;  %v823_v10 = vadd.f32 %v931_v58, %v822_v8 }
 0xa1d   :  { %v843_v11 = vadd.f32 %v931_v58, %v842_v9  ;;  %854 = vst.msk [vmem:[#allocation12 + $0x18] sm:$0xff] %vm721_vm10, %v828_v6 }
 0xa1e   :  { %858 = vst.msk [vmem:[#allocation12 + $0x38] sm:$0xff] %vm721_vm10, %v848_v7  ;;  %853 = vst.msk [vmem:[#allocation12 + $0x10] sm:$0xff] %vm721_vm10, %v823_v10 }
 0xa1f   :  { %857 = vst.msk [vmem:[#allocation12 + $0x30] sm:$0xff] %vm721_vm10, %v843_v11 }
 0xa20   :  { %1283 = shalt.err (!%p1280_p10)
}
 0xa21   :  { %s1284_s14 = scalar_lea.hbm %s1707_s11, 1024 }
 0xa22   :  { %p1285_p11 = scmp.ne.s32.totalorder %s1707_s11, %s1284_s14  ;;  %p1288_p12 = scmp.lt.u32.totalorder %s1284_s14, %s1707_s11 }
 0xa24   :  { %p1290_p13 = pnand %p1288_p12, %p1285_p11 }
 0xa26   :  { %1293 = shalt.err (!%p1290_p13)
}
 0xa27   :  { %870 = dma.vmem_to_hbm [thread:$0]  %s865_s2, 1024, %s1707_s11, [#allocation6], %s1351_s27, %s1351_s27, %s1352_s28  }
 0xa28   :  { %1324 = dma.done.wait [#allocation6], 1024  }
 0xa29   :  { %1325 = vsyncadd [#allocation6], 4294966272 }
 0xa2a   :  { %874 = vsyncpa [#allocation5], 1 }
 0xa2b   :  { %875 = vsyncpa [#allocation8], 1 }
 0xa2c   :  { %876 = vsyncpa [#allocation11], 1 }
 0xa2d   :  { %877 = vsyncpa [#allocation6], 1 }

</bundles_post_ra>
